<compile_context>
chip_gen: v7x
topology: tpu7x:2x2x1
jax: 0.10.0
libtpu: 0.0.40
codegen_flags: <defaults>
</compile_context>

<pallas_src>
import jax
import jax.numpy as jnp
from jax.experimental import pallas as pl
from jax.experimental.pallas import tpu as pltpu


# ---------------------------------------------------------------------------
# VMEM budgeting (generation aware: v7x has only 64 MiB per TensorCore).
# ---------------------------------------------------------------------------
def _vmem_capacity_bytes():
    try:
        info = pltpu.get_tpu_info()
        cap = int(getattr(info, "vmem_capacity_bytes", 0))
        if cap >= 16 * 1024 * 1024:
            return cap
    except Exception:
        pass
    return 64 * 1024 * 1024


_VMEM_CAP = _vmem_capacity_bytes()
_VMEM_LIMIT = min(int(_VMEM_CAP * 3 // 4), 96 * 1024 * 1024)
_TILE_BUDGET = _VMEM_LIMIT // 3            # target working set per pallas_call


def _pick_row_tile(h, w, cost_fn, need_even, budget):
    """Largest row count TR dividing H whose working set (cost_fn(TR), which
    may include a quadratic upsample-matrix term) fits `budget`.  When TR < H
    the flat blocks (TR*W, TR*W//4) must satisfy the (8,128)/full-dim rule."""
    valid = []
    for tr in range(1, h + 1):
        if h % tr:
            continue
        if need_even and tr % 2:
            continue
        if tr != h:
            tm = tr * w
            if tm % 128:
                continue
            if need_even and (tm // 4) % 128:
                continue
        valid.append(tr)
    if not valid:
        return h
    for tr in sorted(valid, reverse=True):
        if cost_fn(tr) <= budget:
            return tr
    return min(valid)


def _pick_flat_tile(mo, per_elem_bytes, budget):
    """Flat spatial tile: a multiple of 128 unless a single full tile is used."""
    if mo * per_elem_bytes <= budget:
        return mo, 1
    tm = max(128, (budget // per_elem_bytes) // 128 * 128)
    nt = -(-mo // tm)
    return tm, nt


# ---------------------------------------------------------------------------
# Kernels
# ---------------------------------------------------------------------------
def _make_reduce_kernel(with_res):
    """1x1 conv + folded-BN bias + ReLU (+ 2x-upsampled top-down residual)."""

    def kernel(x_ref, w_ref, b_ref, *rest):
        if with_res:
            r_ref, e_ref, o_ref = rest
        else:
            (o_ref,) = rest
        # x_ref: (1, Cin, TM) native dtype  w_ref: (Cout, Cin) bf16
        # b_ref: (Cout, 1) f32
        x = x_ref[0].astype(jnp.bfloat16)
        y = jnp.dot(w_ref[...], x,
                    preferred_element_type=jnp.float32)          # (Cout, TM)
        y = jnp.maximum(y + b_ref[...], 0.0)                     # bias + ReLU
        if with_res:
            # Nearest 2x upsample of the coarse top-down tile on the MXU:
            # (Cout, TM//4) @ (TM//4, TM) 0/1 expansion matrix.
            y = y + jnp.dot(r_ref[0], e_ref[...],
                            preferred_element_type=jnp.float32)
        o_ref[0] = y.astype(o_ref.dtype)

    return kernel


def _make_conv3x3_kernel(tm, wp, n_mt):
    """3x3 'same' conv + folded-BN bias + ReLU, no im2col.

    Works on the width-padded flat spatial axis: output position p = h*Wp + w
    reads input positions p + kh*Wp + kw of the zero-padded image, so the nine
    taps are nine shifted matmuls over one halo'd tile.  The halo'd tile is
    DMA'd manually (double buffered; next tile prefetched during compute).
    """
    halo = 2 * wp + 2
    tmh = tm + halo
    aligned = (tm % 128 == 0)

    def kernel(w_ref, b_ref, x_hbm, o_ref, xbuf, sem):
        n = pl.program_id(0)
        m = pl.program_id(1)

        def dma(mm, slot):
            start = mm * tm
            if aligned:
                start = pl.multiple_of(start, 128)
            return pltpu.make_async_copy(
                x_hbm.at[n, :, pl.ds(start, tmh)],
                xbuf.at[slot],
                sem.at[slot])

        @pl.when(m == 0)
        def _():                          # prime the first tile of this image
            dma(0, 0).start()

        slot = m % 2
        dma(m, slot).wait()

        @pl.when(m + 1 < n_mt)
        def _():                          # prefetch the next tile
            dma(m + 1, 1 - slot).start()

        cout = w_ref.shape[1]
        acc = jnp.zeros((cout, tm), jnp.float32)
        for t in range(9):                # taps: kh = t // 3, kw = t % 3
            off = (t // 3) * wp + (t % 3)
            xs = xbuf[slot, :, pl.ds(off, tm)]                   # (Cin, TM) bf16
            acc = acc + jnp.dot(w_ref[t], xs,
                                preferred_element_type=jnp.float32)
        y = jnp.maximum(acc + b_ref[...], 0.0)
        o_ref[0] = y.astype(o_ref.dtype)

    return kernel


# ---------------------------------------------------------------------------
# Wrappers
# ---------------------------------------------------------------------------
def _nearest2x_matrix(th, w):
    """(th//2 * w//2, th * w) 0/1 matrix: coarse_flat @ E == 2x nearest upsample."""
    a = (jnp.arange(th // 2)[:, None] == (jnp.arange(th)[None, :] // 2))
    b = (jnp.arange(w // 2)[:, None] == (jnp.arange(w)[None, :] // 2))
    return jnp.kron(a.astype(jnp.float32), b.astype(jnp.float32))


def reduce_conv_bn_relu(x, w, bias, residual=None):
    """relu(bn(conv1x1(x))) [+ nearest2x(residual)], one fused Pallas kernel.

    x:        (N, Cin, H, W)  (any float dtype; cast to bf16 in-kernel)
    w:        (Cout, Cin)   BN scale already folded in
    bias:     (Cout,)       folded conv bias + BN shift
    residual: (N, Cout, H//2, W//2) coarse top-down level, or None
    returns   (N, Cout, H, W) bf16
    """
    N, Cin, H, W = x.shape
    Cout = w.shape[0]
    M = H * W
    with_res = residual is not None
    xb = jnp.dtype(x.dtype).itemsize

    def cost(tr):
        tm = tr * W
        c = 2 * Cin * tm * xb            # double-buffered input tile
        c += 2 * Cout * tm * 2           # double-buffered output tile (bf16)
        c += Cout * tm * 4               # f32 accumulator value
        if with_res:
            c += 2 * Cout * (tm // 4) * 2        # residual tile (bf16)
            c += 2 * (tm // 4) * tm * 2          # expansion matrix (bf16)
        return c

    TR = _pick_row_tile(H, W, cost, with_res, _TILE_BUDGET)
    TM = TR * W
    n_mt = H // TR

    x_flat = x.reshape(N, Cin, M)                      # no wrapper-side cast
    w_b = w.astype(jnp.bfloat16)
    b_col = bias.reshape(Cout, 1).astype(jnp.float32)

    in_specs = [
        pl.BlockSpec((1, Cin, TM), lambda n, m: (n, 0, m)),
        pl.BlockSpec((Cout, Cin), lambda n, m: (0, 0)),
        pl.BlockSpec((Cout, 1), lambda n, m: (0, 0)),
    ]
    args = [x_flat, w_b, b_col]
    if with_res:
        Hc, Wc = H // 2, W // 2
        assert residual.shape == (N, Cout, Hc, Wc), residual.shape
        r_flat = residual.reshape(N, Cout, Hc * Wc).astype(jnp.bfloat16)
        e_mat = _nearest2x_matrix(TR, W).astype(jnp.bfloat16)   # (TM//4, TM)
        in_specs += [
            pl.BlockSpec((1, Cout, TM // 4), lambda n, m: (n, 0, m)),
            pl.BlockSpec((TM // 4, TM), lambda n, m: (0, 0)),
        ]
        args += [r_flat, e_mat]

    out = pl.pallas_call(
        _make_reduce_kernel(with_res),
        out_shape=jax.ShapeDtypeStruct((N, Cout, M), jnp.bfloat16),
        grid=(N, n_mt),
        in_specs=in_specs,
        out_specs=pl.BlockSpec((1, Cout, TM), lambda n, m: (n, 0, m)),
        compiler_params=pltpu.CompilerParams(
            dimension_semantics=("parallel", "parallel"),
            vmem_limit_bytes=_VMEM_LIMIT),
    )(*args)
    return out.reshape(N, Cout, H, W)


def conv3x3_bn_relu(x, w9, bias, out_dtype=jnp.bfloat16):
    """relu(bn(conv3x3(x, padding=1))), fused, without im2col.

    x:    (N, Cin, H, W)
    w9:   (9, Cout, Cin) taps in (kh, kw) row-major order, BN scale folded in
    bias: (Cout,)
    """
    N, Cin, H, W = x.shape
    Cout = w9.shape[1]
    Hp, Wp = H + 2, W + 2
    Mo = H * Wp                      # output positions on the width-padded grid
    halo = 2 * Wp + 2
    ob = jnp.dtype(out_dtype).itemsize

    # double-buffered halo'd x (bf16) + double-buffered out + f32 acc + tap slack
    per_elem = 2 * Cin * 2 + 2 * Cout * ob + Cout * 4 + 2 * Cin * 2
    TM, n_mt = _pick_flat_tile(Mo, per_elem, _TILE_BUDGET)
    Mo_p = n_mt * TM
    Lx = Mo_p + halo

    xp = jnp.pad(x.astype(jnp.bfloat16), ((0, 0), (0, 0), (1, 1), (1, 1)))
    x_flat = xp.reshape(N, Cin, Hp * Wp)
    x_flat = jnp.pad(x_flat, ((0, 0), (0, 0), (0, Lx - Hp * Wp)))

    w_b = w9.astype(jnp.bfloat16)
    b_col = bias.reshape(Cout, 1).astype(jnp.float32)

    grid_spec = pltpu.PrefetchScalarGridSpec(
        num_scalar_prefetch=0,
        grid=(N, n_mt),
        in_specs=[
            pl.BlockSpec((9, Cout, Cin), lambda n, m: (0, 0, 0)),
            pl.BlockSpec((Cout, 1), lambda n, m: (0, 0)),
            pl.BlockSpec(memory_space=pl.ANY),            # x stays in HBM
        ],
        out_specs=pl.BlockSpec((1, Cout, TM), lambda n, m: (n, 0, m)),
        scratch_shapes=[
            pltpu.VMEM((2, Cin, TM + halo), jnp.bfloat16),    # halo'd double buffer
            pltpu.SemaphoreType.DMA((2,)),
        ],
    )
    out = pl.pallas_call(
        _make_conv3x3_kernel(TM, Wp, n_mt),
        out_shape=jax.ShapeDtypeStruct((N, Cout, Mo_p), out_dtype),
        grid_spec=grid_spec,
        compiler_params=pltpu.CompilerParams(
            dimension_semantics=("parallel", "arbitrary"),
            vmem_limit_bytes=_VMEM_LIMIT),
    )(w_b, b_col, x_flat)

    out = out[:, :, :Mo].reshape(N, Cout, H, Wp)[:, :, :, :W]
    return out


# ---------------------------------------------------------------------------
# Parameters (eval-mode BatchNorm folded) and the FPN forward pass
# ---------------------------------------------------------------------------
def make_convbnrelu_params(key, cin, cout, k):
    """Deterministic Conv2d(bias=True) + BatchNorm2d (eval) with the BN scale
    folded into the conv weights, in the layout the kernels expect."""
    kw, kb, kg, kbt, km, kv = jax.random.split(key, 6)
    w = 0.1 * jax.random.normal(kw, (k, k, cin, cout), jnp.float32)
    b = 0.1 * jax.random.normal(kb, (cout,), jnp.float32)
    gamma = 1.0 + 0.1 * jax.random.normal(kg, (cout,), jnp.float32)
    beta = 0.1 * jax.random.normal(kbt, (cout,), jnp.float32)
    mean = 0.1 * jax.random.normal(km, (cout,), jnp.float32)
    var = 0.5 + jax.random.uniform(kv, (cout,), jnp.float32)
    eps = 1e-5
    s = gamma / jnp.sqrt(var + eps)                  # BN scale
    w_fold = w * s                                   # fold scale into weights
    bias = (b - mean) * s + beta                     # folded bias
    w_k = jnp.transpose(w_fold.reshape(k * k, cin, cout), (0, 2, 1))
    if k == 1:
        return w_k[0], bias                          # (Cout, Cin)
    return w_k, bias                                 # (K*K, Cout, Cin)


def _nearest_upsample(x, f):
    """F.interpolate(mode='nearest', scale_factor=f) on NCHW (wrapper glue)."""
    x = jnp.repeat(x, f, axis=2)
    return jnp.repeat(x, f, axis=3)


def fpn_forward(xs, params):
    """xs = (c2, c3, c4, c5), each NCHW.  Returns the NCHW FPN output."""
    c2, c3, c4, c5 = xs

    p5 = reduce_conv_bn_relu(c5, *params['r5'])
    p4 = reduce_conv_bn_relu(c4, *params['r4'], residual=p5)
    p4 = conv3x3_bn_relu(p4, *params['s4'])
    p3 = reduce_conv_bn_relu(c3, *params['r3'], residual=p4)
    p3 = conv3x3_bn_relu(p3, *params['s3'])
    p2 = reduce_conv_bn_relu(c2, *params['r2'], residual=p3)
    p2 = conv3x3_bn_relu(p2, *params['s2'])

    # Final head: concat [p2, 2x(p3), 4x(p4), 8x(p5)] over channels, 3x3 conv.
    # TODO(synk): fuse the nearest upsample + channel concat into the final
    # conv kernel's input DMA instead of materializing them in HBM.
    cat = jnp.concatenate(
        [p2, _nearest_upsample(p3, 2), _nearest_upsample(p4, 4),
         _nearest_upsample(p5, 8)], axis=1)
    return conv3x3_bn_relu(cat, *params['out'], out_dtype=jnp.float32)


if __name__ == "__main__":
    key = jax.random.PRNGKey(0)
    keys = jax.random.split(key, 12)

    # Small synthetic config consistent with the module.
    in_channels = [4, 8, 16, 32]   # channels of (c2, c3, c4, c5)
    conv_out = 16                  # FPN `inner_channels` argument
    inner = conv_out // 4          # per-level reduced channels

    params = {
        'r2': make_convbnrelu_params(keys[0], in_channels[0], inner, 1),
        'r3': make_convbnrelu_params(keys[1], in_channels[1], inner, 1),
        'r4': make_convbnrelu_params(keys[2], in_channels[2], inner, 1),
        'r5': make_convbnrelu_params(keys[3], in_channels[3], inner, 1),
        's4': make_convbnrelu_params(keys[4], inner, inner, 3),
        's3': make_convbnrelu_params(keys[5], inner, inner, 3),
        's2': make_convbnrelu_params(keys[6], inner, inner, 3),
        'out': make_convbnrelu_params(keys[7], conv_out, conv_out, 3),
    }

    N = 2
    c2 = jax.random.normal(keys[8], (N, in_channels[0], 16, 16), jnp.float32)
    c3 = jax.random.normal(keys[9], (N, in_channels[1], 8, 8), jnp.float32)
    c4 = jax.random.normal(keys[10], (N, in_channels[2], 4, 4), jnp.float32)
    c5 = jax.random.normal(keys[11], (N, in_channels[3], 2, 2), jnp.float32)

    out = fpn_forward((c2, c3, c4, c5), params)
    out = jax.block_until_ready(out)
    assert out.shape == (N, conv_out, 16, 16), out.shape
    assert bool(jnp.all(out >= 0.0))  # ReLU output
    print("KERNEL_OK")
</pallas_src>

<mosaic_0001>
module attributes {stable_mosaic.version = 11 : i64} {
  func.func @kernel(%arg0: i32, %arg1: i32, %arg2: memref<1x32x4xf32, #tpu.memory_space<vmem>>, %arg3: memref<4x32xbf16, #tpu.memory_space<vmem>>, %arg4: memref<4x1xf32, #tpu.memory_space<vmem>>, %arg5: memref<1x4x4xbf16, #tpu.memory_space<vmem>>) attributes {dimension_semantics = [#tpu.dimension_semantics<parallel>, #tpu.dimension_semantics<parallel>], iteration_bounds = array<i64: 2, 1>, scalar_prefetch = 0 : i64, scratch_operands = 0 : i64, tpu.core_type = #tpu.core_type<tc>, window_params = [{transform_indices = @transform_0, window_bounds = array<i64: 1, 32, 4>}, {pipeline_mode = #tpu.pipeline_mode<synchronous>, transform_indices = @transform_1, window_bounds = array<i64: 4, 32>}, {pipeline_mode = #tpu.pipeline_mode<synchronous>, transform_indices = @transform_2, window_bounds = array<i64: 4, 1>}, {transform_indices = @transform_3, window_bounds = array<i64: 1, 4, 4>}]} {
    %c0 = arith.constant 0 : index
    %c0_0 = arith.constant 0 : index
    %c0_1 = arith.constant 0 : index
    %0 = vector.load %arg2[%c0, %c0_0, %c0_1] : memref<1x32x4xf32, #tpu.memory_space<vmem>>, vector<1x32x4xf32>
    %1 = vector.shape_cast %0 : vector<1x32x4xf32> to vector<32x4xf32>
    %2 = arith.truncf %1 : vector<32x4xf32> to vector<32x4xbf16>
    %c0_2 = arith.constant 0 : index
    %c0_3 = arith.constant 0 : index
    %3 = vector.load %arg3[%c0_2, %c0_3] : memref<4x32xbf16, #tpu.memory_space<vmem>>, vector<4x32xbf16>
    %cst = arith.constant dense<0.000000e+00> : vector<4x4xf32>
    %4 = tpu.matmul %3, %2, %cst {dimension_numbers = #tpu.dot_dimension_numbers<[1], [0], [0], [1], [0, 0, 1, 1], [], []>} : vector<4x32xbf16>, vector<32x4xbf16>, vector<4x4xf32> -> vector<4x4xf32>
    %c0_4 = arith.constant 0 : index
    %c0_5 = arith.constant 0 : index
    %5 = vector.load %arg4[%c0_4, %c0_5] : memref<4x1xf32, #tpu.memory_space<vmem>>, vector<4x1xf32>
    %6 = vector.broadcast %5 : vector<4x1xf32> to vector<4x4xf32>
    %7 = arith.addf %4, %6 : vector<4x4xf32>
    %cst_6 = arith.constant 0.000000e+00 : f32
    %8 = vector.broadcast %cst_6 : f32 to vector<4x4xf32>
    %9 = arith.maximumf %7, %8 : vector<4x4xf32>
    %10 = arith.truncf %9 : vector<4x4xf32> to vector<4x4xbf16>
    %c0_7 = arith.constant 0 : index
    %c0_8 = arith.constant 0 : index
    %c0_9 = arith.constant 0 : index
    %11 = vector.load %arg5[%c0_7, %c0_8, %c0_9] : memref<1x4x4xbf16, #tpu.memory_space<vmem>>, vector<1x4x4xbf16>
    %12 = vector.shape_cast %11 : vector<1x4x4xbf16> to vector<4x4xbf16>
    %13 = vector.shape_cast %10 : vector<4x4xbf16> to vector<1x4x4xbf16>
    tpu.vector_store %arg5[%c0_7, %c0_8, %c0_9], %13 {strides = array<i32>} : memref<1x4x4xbf16, #tpu.memory_space<vmem>>, vector<1x4x4xbf16>,
    return
  }
  func.func @transform_0(%arg0: i32, %arg1: i32) -> (i32, i32, i32) {
    %c0_i32 = arith.constant 0 : i32
    %c0_i32_0 = arith.constant 0 : i32
    return %arg0, %c0_i32, %arg1 : i32, i32, i32
  }
  func.func @transform_1(%arg0: i32, %arg1: i32) -> (i32, i32) {
    %c0_i32 = arith.constant 0 : i32
    %c0_i32_0 = arith.constant 0 : i32
    %c0_i32_1 = arith.constant 0 : i32
    return %c0_i32, %c0_i32_0 : i32, i32
  }
  func.func @transform_2(%arg0: i32, %arg1: i32) -> (i32, i32) {
    %c0_i32 = arith.constant 0 : i32
    %c0_i32_0 = arith.constant 0 : i32
    %c0_i32_1 = arith.constant 0 : i32
    return %c0_i32, %c0_i32_0 : i32, i32
  }
  func.func @transform_3(%arg0: i32, %arg1: i32) -> (i32, i32, i32) {
    %c0_i32 = arith.constant 0 : i32
    %c0_i32_0 = arith.constant 0 : i32
    return %arg0, %c0_i32, %arg1 : i32, i32, i32
  }
}

</mosaic_0001>

<bundles_post_ra>
// kernel: tpu_custom_call.1
= control target key start
LH: loop header
LB: loop body
LE: loop exit
PB: predicated region body
PF: predicated region fallthrough
CT: control target
= control target key end

     0   :  { %8 = vsyncpa [#allocation3], 0  ;;  %s651_s0 = inlined_call_operand.vmem [shape: f32[2,32,4], index: 0, kind: input, shape index: {}]   ;;  %s652_s1 = inlined_call_operand.vmem [shape: bf16[4,32], index: 1, kind: input, shape index: {}]   ;;  %s653_s2 = inlined_call_operand.vmem [shape: f32[4,1], index: 2, kind: input, shape index: {}]   ;;  %s654_s3 = inlined_call_operand.hbm [shape: bf16[2,4,4], index: 3, kind: output, shape index: {}]  }
   0x1   :  { %10 = vsyncpa [#allocation3 + $0x1], 0  ;;  %s533_s12 = smov 0   ;;  %s535_s13 = smov 0  }
   0x2   :  { %s537_s14 = smov 0   ;;  %s539_s15 = smov 0  }
   0x3   :  { %s541_s16 = smov 0   ;;  %s543_s17 = smov 0  }
   0x4 LB: > { %s345_s18 = sadd.s32 4294967295, %s507_s17   ;;  %s346_s19 = sadd.s32 4294967294, %s507_s17   ;;  %s507_s17 = sphi %s543_s17, %s16_s17   ;;  %s503_s16 = sphi %s541_s16, %s661_s16   ;;  %s499_s15 = sphi %s539_s15, %s660_s15   ;;  %s495_s14 = sphi %s537_s14, %s659_s14   ;;  %s491_s13 = sphi %s535_s13, %s658_s13   ;;  %s487_s12 = sphi %s533_s12, %s657_s12  }
   0x5   : > { %s28_s20 = sadd.s32 1, %s503_s16  ;;  %s107_s21 = sadd.s32 1, %s495_s14 }
   0x6   : > { %p30_p0 = scmp.ge.s32.totalorder %s28_s20, 2  ;;  %p117_p1 = scmp.ne.s32.totalorder %s495_s14, %s491_s13 }
   0x7   : > { %p118_p2 = scmp.eq.s32.totalorder %s345_s18, 1  ;;  %p123_p3 = scmp.ne.s32.totalorder %s491_s13, %s487_s12 }
   0x8   : > { %s663_s20 = smov (%p30_p0, %s28_s20), 0  ;;  %p124_p5 = scmp.eq.s32.totalorder %s346_s19, 1 }
   0x9   : > { %p573_p4 = por %p118_p2, %p117_p1  ;;  %s102_s23 = ssub.s32 %s503_s16, %s663_s20 }
   0xa   : > { %p349_p6 = scmp.ge.s32.totalorder %s507_s17, 1  ;;  %p105_p7 = scmp.eq.s32.totalorder %s102_s23, 0 }
   0xb   : > { %p580_p8 = por %p124_p5, %p123_p3  ;;  %p159_p9 = scmp.lt.s32.totalorder %s507_s17, 3 }
   0xc   : > { %s586_s25 = scalar_select %p105_p7, %s495_s14, %s107_s21  }
   0xd   : > { %p160_p10 = pnand %p349_p6, %p159_p9 }
   0xe   : > { %p186_p11 = scmp.lt.s32.totalorder (!%p160_p10), %s499_s15, 1  ;;  %v509_v0 = vmov (!%p160_p10), 0.0   ;;  %vm510_vm0 = vmmov (!%p160_p10), 0   ;;  %v202_v1 = vld [vmem:[%s653_s2] sm:$0xf] (!%p160_p10)  ;;  %v511_v2 = vmov (!%p160_p10), 0  }
   0xf   : > { %163 = sbr.rel (%p160_p10) target bundleno = 268 (0x10c), region = 32  ;;  %362 = vmatprep.subr.bf16.mxu0 (!%p160_p10), %v509_v0  ;;  %366 = vmatprep.mubr.msk.bf16.mxu0 (!%p160_p10), %vm510_vm0, %v509_v0  ;;  %v201_v9 = vld [vmem:[%s652_s1] sm:$0x3] (!%p160_p10)  ;;  %vm208_vm1 = vcmask (!%p160_p10), 261120   ;;  %s183_s8 = sand.u32 (!%p160_p10), 1, %s491_s13   ;;  %vm254_vm2 = vcmask (!%p160_p10), 25600  }
  0x10   : > { %428 = vset.pattern.permute.xlu0 (!%p160_p10), %v511_v2  ;;  %s350_s9 = sshll.u32 (!%p160_p10), %s183_s8, 1  ;;  %s355_s10 = sshll.u32 (!%p160_p10), %s499_s15, 5 }
  0x11   : > { %205 = vperm.xlu0 (!%p160_p10), %428, %v202_v1   ;;  %s185_s11 = scalar_lea.vmem (!%p160_p10), [#allocation2], %s350_s9  ;;  %s604_s23 = scalar_lea.hbm (!%p160_p10), %s654_s3, %s355_s10 }
  0x12   : > { %s271_s18 = sshll.u32 (!%p160_p10), %s185_s11, 4  ;;  %s257_s26 = scalar_lea.sflag (!%p160_p10), [#allocation3], %s183_s8  ;;  %s606_s18 = int_to_ptr.vmem [resolvable:$true] %s271_s18 }
  0x13   : > { %s429_s27 = scalar_lea.vmem (!%p160_p10), %s606_s18, 32 }
  0x14   : > { %p430_p12 = scmp.ne.s32.totalorder (!%p160_p10), %s606_s18, %s429_s27 }
  0x16   : > { %s187_s28 = scalar_select %p186_p11, %s499_s15, 1 }
  0x17   : > { %p431_p13 = pnand %p430_p12, %p573_p4  ;;  %s512_s15 = smov [#allocation2]  }
  0x18   : > { %s358_s29 = sshll.u32 %s187_s28, 5  ;;  %s433_s28 = sshll.u32 %s512_s15, 4  ;;  %s434_s28 = int_to_ptr.vmem [resolvable:$false] %s433_s28 }
  0x19   : > { %s193_s5 = scalar_lea.vmem %s651_s0, %s358_s29  ;;  %p432_p0 = pneg %p431_p13 }
  0x1a   : > { %v195_v3 = vld [vmem:[%s193_s5] sm:$0xff]  ;;  %v196_v4 = vld [vmem:[%s193_s5 + $0x8] sm:$0xff]  ;;  %v197_v5 = vld [vmem:[%s193_s5 + $0x10] sm:$0xff]  ;;  %s435_s29 = scalar_lea.vmem %s434_s28, 64  ;;  %p436_p1 = scmp.lt.s32.totalorder %s606_s18, %s434_s28 }
  0x1b   : > { %v199_v6 = vpack.c.bf16 %v196_v4, %v195_v3  ;;  %v198_v7 = vld [vmem:[%s193_s5 + $0x18] sm:$0xff]  ;;  %p437_p2 = scmp.lt.s32.totalorder %s435_s29, %s429_s27 }
  0x1c   : > { %v200_v8 = vpack.c.bf16 %v198_v7, %v197_v5 }
  0x1d   : > { %363 = vmatpush3.bf16.msra.mxu0 %v199_v6  ;;  %p438_p3 = por %p437_p2, %p436_p1 }
  0x1e   : > { %364 = vmatprep.subr.bf16.mxu0 %v509_v0 }
  0x1f   : > { %p439_p5 = pnand %p438_p3, %p432_p0 }
  0x21   : > { %365 = vmatpush3.bf16.msra.mxu0 %v200_v8 }
  0x24   : > { %367 = vmatmul.mubr.msk.bf16.vlgmr.msra.gmra.mrb[0].mxu0 %vm208_vm1, %v201_v9 }
  0x90   : > { %v206_v10 = vpop.permute.xlu0 %205 }
  0xf7   : > { %v246_v11 = vpop.f32.mrb[0].mxu0 }
  0xf8   : > { %v247_v12 = vadd.f32 %v246_v11, %v206_v10  ;;  %v368_v13 = vpop.f32.mrb[1].mxu0 }
  0xf9   : > { %v249_v14 = vpop.f32.mrb[2].mxu0 }
  0xfa   : > { %v252_v15 = vmax.f32 %v247_v12, 0.0  ;;  %v369_v16 = vpop.f32.mrb[3].mxu0 }
  0xfc   : > { %v253_v17 = vpack.c.bf16 %v252_v15, %v252_v15 }
  0xfe   : > { %255 = vst.msk [vmem:[%s185_s11] sm:$0x3] %vm254_vm2, %v253_v17 }
  0xff   : > { %442 = shalt.err (!%p439_p5)
}
 0x100   : > { %s443_s30 = scalar_lea.hbm %s604_s23, 32  ;;  %s447_s6 = scalar_lea.hbm %s654_s3, 64 }
 0x101   : > { %p444_p6 = scmp.ne.s32.totalorder %s604_s23, %s443_s30  ;;  %p448_p10 = scmp.lt.u32.totalorder %s604_s23, %s654_s3 }
 0x102   : > { %p449_p11 = scmp.lt.u32.totalorder %s447_s6, %s443_s30  ;;  %p451_p13 = scmp.lt.u32.totalorder %s443_s30, %s604_s23 }
 0x103   : > { %p445_p7 = pnand %p444_p6, %p573_p4 }
 0x104   : > { %p450_p12 = por %p449_p11, %p448_p10 }
 0x105   : > { %p446_p9 = pneg %p445_p7 }
 0x106   : > { %p452_p0 = por %p451_p13, %p450_p12 }
 0x108   : > { %p453_p1 = pnand %p452_p0, %p446_p9 }
 0x10a   : > { %456 = shalt.err (!%p453_p1)
}
 0x10b   : > { %370 = dma.vmem_to_hbm [thread:$0]  (%p573_p4), %s606_s18, 32, %s604_s23, %s257_s26  }
 0x10c PF: > { %p376_p2 = scmp.ge.s32.totalorder %s507_s17, 2  ;;  %s283_s9 = sand.u32 1, %s487_s12  }
 0x10d   : > { %s284_s10 = scalar_lea.sflag [#allocation3], %s283_s9 }
 0x10e   : > { %p373_p3 = pnand %p376_p2, %p580_p8 }
 0x110   : > { %482 = dma.done.wait (!%p373_p3), %s284_s10, 32  }
 0x111   : > { %484 = vsyncadd (!%p373_p3), %s284_s10, 4294967264  ;;  %s16_s17 = sadd.s32 1, %s507_s17   ;;  %s657_s12 = smov %s491_s13 }
 0x112   : > { %p13_p5 = scmp.ge.s32.totalorder %s16_s17, 4   ;;  %s658_s13 = smov %s495_s14 }
 0x113   : > { %s659_s14 = smov %s586_s25  ;;  %s660_s15 = smov %s503_s16 }
 0x114   : > { %s661_s16 = smov %s663_s20  ;;  %15 = sbr.rel (!%p13_p5) target bundleno = 4 (0x4), region = 67 }
 0x11b   :  { %289 = vsyncpa [#allocation3], 1 }
 0x11c   :  { %291 = vsyncpa [#allocation3 + $0x1], 1 }

</bundles_post_ra>
